<compile_context>
chip_gen: v6e
topology: v6e:2x2x1
jax: 0.10.0
libtpu: 0.0.40
codegen_flags: <defaults>
</compile_context>

<pallas_src>
import jax
import jax.numpy as jnp
from jax.experimental import pallas as pl
from jax.experimental.pallas import tpu as pltpu


def _round_up(x, m):
    return (x + m - 1) // m * m


def _cdiv(a, b):
    return -(-a // b)


def _resident_spec(block_shape, index_map):
    """Single-buffered BlockSpec for grid-invariant (VMEM-resident) operands."""
    try:
        return pl.BlockSpec(block_shape, index_map, pipeline_mode=pl.Buffered(1))
    except TypeError:  # older jax without pipeline_mode: default double-buffer
        return pl.BlockSpec(block_shape, index_map)


def fusion_kernel(img_ref, txt_ref, bn_ref, w_ref, b_ref, o_ref):
    """Fused BN(folded, eval) -> ReLU -> (Dropout=id) -> Linear.

    img_ref / txt_ref : (bm, E_pad)        bf16 batch tile of each encoding
    bn_ref            : (8, E_pad)         rows 0..3 = s_img, t_img, s_txt, t_txt
    w_ref             : (2*E_pad, hn)      bf16 packed weight slab
    b_ref             : (1, hn)            f32 bias (zero-padded)
    o_ref             : (bm, hn)           bf16 output tile
    """
    bn = bn_ref[...]
    s_img = bn[0:1, :]
    t_img = bn[1:2, :]
    s_txt = bn[2:3, :]
    t_txt = bn[3:4, :]

    # BatchNorm1d (eval, folded) + ReLU in f32 on the VPU.
    h_img = jnp.maximum(img_ref[...].astype(jnp.float32) * s_img + t_img, 0.0)
    h_txt = jnp.maximum(txt_ref[...].astype(jnp.float32) * s_txt + t_txt, 0.0)
    # Dropout(0.2) is identity in eval mode.

    # One K = 2*E_pad MXU matmul (bf16 inputs, f32 accumulation).
    h = jnp.concatenate(
        [h_img.astype(jnp.bfloat16), h_txt.astype(jnp.bfloat16)], axis=1)
    acc = jnp.dot(h, w_ref[...], preferred_element_type=jnp.float32)
    o_ref[...] = (acc + b_ref[...]).astype(o_ref.dtype)


def fusion_network_forward(image_encodings, text_encodings, params):
    """JAX wrapper: BN fold, padding, generation-aware tiling, Pallas call."""
    B, E = image_encodings.shape
    H = params["b"].shape[0]
    eps = 1e-5

    # ---- fold BatchNorm1d running stats into per-feature scale/shift ------
    scale = params["bn_gamma"] / jnp.sqrt(params["bn_var"] + eps)   # (2E,)
    shift = params["bn_beta"] - params["bn_mean"] * scale           # (2E,)

    # ---- lane-dense feature padding ----------------------------------------
    E_pad = _round_up(max(E, 128), 128)
    H_pad = _round_up(max(H, 128), 128)

    # ---- generation-aware VMEM budget --------------------------------------
    try:
        vmem_cap = pltpu.get_tpu_info().vmem_capacity_bytes
    except Exception:
        vmem_cap = 64 << 20  # conservative (v7x-sized) fallback
    budget = max((vmem_cap * 3) // 4, 32 << 20)

    # ---- H tiling: resident weight slab must fit ~40% of the budget --------
    w_budget = (2 * budget) // 5
    hn = H_pad
    w_bufs = 1
    while w_bufs * (2 * E_pad) * hn * 2 > w_budget and hn > 128:
        hn = _round_up(max(128, hn // 2), 128)
        w_bufs = 2  # H-tiled weights are re-fetched -> double-buffered
    H_pad = _round_up(H_pad, hn)
    n_h = H_pad // hn
    if n_h == 1:
        w_bufs = 1

    # ---- batch tiling (even split, >=2 tiles when possible for megacore) ---
    B8 = _round_up(B, 8)
    target_bm = 1024 if budget >= (72 << 20) else 512
    n_b = max(1, _cdiv(B8, target_bm))
    if n_b == 1 and B8 >= 16:
        n_b = 2
    bm = _round_up(_cdiv(B8, n_b), 8)

    def vmem_need(bm_):
        return (2 * 2 * bm_ * E_pad * 2        # bf16 img/txt tiles, 2x buffered
                + 2 * bm_ * hn * 2             # bf16 output tile, 2x buffered
                + w_bufs * (2 * E_pad) * hn * 2
                + 8 * E_pad * 4 + hn * 4       # BN pack + bias (1x buffered)
                + bm_ * 2 * E_pad * 2          # in-kernel concat temp (bf16)
                + bm_ * hn * 4)                # f32 accumulator temp

    while vmem_need(bm) > budget and bm > 8:
        bm = _round_up(max(8, bm // 2), 8)
    n_b = _cdiv(B8, bm)
    B_pad = n_b * bm

    # ---- pack / pad operands ------------------------------------------------
    w = params["w"].astype(jnp.bfloat16)                      # (2E, H)
    w_cat = jnp.zeros((2 * E_pad, H_pad), jnp.bfloat16)
    w_cat = w_cat.at[:E, :H].set(w[:E])                       # image half
    w_cat = w_cat.at[E_pad:E_pad + E, :H].set(w[E:])          # text half

    bn_pack = jnp.zeros((8, E_pad), jnp.float32)
    bn_pack = bn_pack.at[0, :E].set(scale[:E])
    bn_pack = bn_pack.at[1, :E].set(shift[:E])
    bn_pack = bn_pack.at[2, :E].set(scale[E:])
    bn_pack = bn_pack.at[3, :E].set(shift[E:])

    bias = jnp.zeros((1, H_pad), jnp.float32).at[:, :H].set(params["b"])

    img = jnp.pad(image_encodings.astype(jnp.bfloat16),
                  ((0, B_pad - B), (0, E_pad - E)))
    txt = jnp.pad(text_encodings.astype(jnp.bfloat16),
                  ((0, B_pad - B), (0, E_pad - E)))

    # ---- BlockSpecs ----------------------------------------------------------
    if n_h == 1:
        w_spec = _resident_spec((2 * E_pad, hn), lambda i, j: (0, j))
        b_spec = _resident_spec((1, hn), lambda i, j: (0, j))
    else:
        w_spec = pl.BlockSpec((2 * E_pad, hn), lambda i, j: (0, j))
        b_spec = pl.BlockSpec((1, hn), lambda i, j: (0, j))

    out = pl.pallas_call(
        fusion_kernel,
        out_shape=jax.ShapeDtypeStruct((B_pad, H_pad), jnp.bfloat16),
        grid=(n_b, n_h),
        in_specs=[
            pl.BlockSpec((bm, E_pad), lambda i, j: (i, 0)),    # image tile
            pl.BlockSpec((bm, E_pad), lambda i, j: (i, 0)),    # text tile
            _resident_spec((8, E_pad), lambda i, j: (0, 0)),   # BN scale/shift
            w_spec,                                            # packed weight
            b_spec,                                            # bias
        ],
        out_specs=pl.BlockSpec((bm, hn), lambda i, j: (i, j)),
        compiler_params=pltpu.CompilerParams(
            dimension_semantics=("parallel", "parallel"),
            vmem_limit_bytes=int(budget),
        ),
    )(img, txt, bn_pack, w_cat, bias)

    return out[:B, :H].astype(jnp.float32)


def init_params(key, embedding_dim, hidden_dim, num_fusion):
    """Deterministic synthetic parameters (shapes match the PyTorch module)."""
    F = embedding_dim * num_fusion
    k_w, k_b, k_g, k_be, k_m, k_v = jax.random.split(key, 6)
    return {
        # Linear(F, hidden_dim): PyTorch weight is (H, F); we store (F, H).
        "w": jax.random.normal(k_w, (F, hidden_dim), jnp.float32) * 0.05,
        "b": jax.random.normal(k_b, (hidden_dim,), jnp.float32) * 0.05,
        # BatchNorm1d(F) affine params + running stats
        "bn_gamma": 1.0 + 0.1 * jax.random.normal(k_g, (F,), jnp.float32),
        "bn_beta": 0.1 * jax.random.normal(k_be, (F,), jnp.float32),
        "bn_mean": 0.1 * jax.random.normal(k_m, (F,), jnp.float32),
        "bn_var": jnp.abs(jax.random.normal(k_v, (F,), jnp.float32)) + 0.5,
    }


def reference_forward(image_encodings, text_encodings, params):
    """Pure-JAX f32 reference matching the PyTorch module's eval forward."""
    x = jnp.concatenate([image_encodings, text_encodings], axis=1)
    eps = 1e-5
    x_hat = (x - params["bn_mean"]) / jnp.sqrt(params["bn_var"] + eps)
    h = jnp.maximum(x_hat * params["bn_gamma"] + params["bn_beta"], 0.0)
    return h @ params["w"] + params["b"]


if __name__ == "__main__":
    # Small shapes consistent with the module's forward:
    # image_encodings (B, E), text_encodings (B, E), concat -> (B, 2E).
    B = 8
    embedding_dim = 32
    num_fusion = 2
    hidden_dim = 32

    key = jax.random.PRNGKey(0)
    k_img, k_txt, k_par = jax.random.split(key, 3)
    image_encodings = jax.random.normal(k_img, (B, embedding_dim), jnp.float32)
    text_encodings = jax.random.normal(k_txt, (B, embedding_dim), jnp.float32)
    params = init_params(k_par, embedding_dim, hidden_dim, num_fusion)

    out = fusion_network_forward(image_encodings, text_encodings, params)
    out = jax.block_until_ready(out)

    ref = reference_forward(image_encodings, text_encodings, params)
    assert out.shape == (B, hidden_dim), out.shape
    # bf16 activation/weight/output rounding vs. the f32 reference.
    assert jnp.allclose(out, ref, atol=2e-2, rtol=2e-2), "mismatch vs reference"

    print("KERNEL_OK")
</pallas_src>

<mosaic_0001>
module attributes {stable_mosaic.version = 11 : i64} {
  func.func @fusion_kernel(%arg0: i32, %arg1: i32, %arg2: memref<8x128xbf16, #tpu.memory_space<vmem>>, %arg3: memref<8x128xbf16, #tpu.memory_space<vmem>>, %arg4: memref<8x128xf32, #tpu.memory_space<vmem>>, %arg5: memref<256x128xbf16, #tpu.memory_space<vmem>>, %arg6: memref<1x128xf32, #tpu.memory_space<vmem>>, %arg7: memref<8x128xbf16, #tpu.memory_space<vmem>>) attributes {dimension_semantics = [#tpu.dimension_semantics<parallel>, #tpu.dimension_semantics<parallel>], iteration_bounds = array<i64: 1, 1>, scalar_prefetch = 0 : i64, scratch_operands = 0 : i64, tpu.core_type = #tpu.core_type<tc>, window_params = [{transform_indices = @transform_0, window_bounds = array<i64: 8, 128>}, {transform_indices = @transform_1, window_bounds = array<i64: 8, 128>}, {pipeline_mode = #tpu.pipeline_mode<synchronous>, transform_indices = @transform_2, window_bounds = array<i64: 8, 128>}, {pipeline_mode = #tpu.pipeline_mode<synchronous>, transform_indices = @transform_3, window_bounds = array<i64: 256, 128>}, {pipeline_mode = #tpu.pipeline_mode<synchronous>, transform_indices = @transform_4, window_bounds = array<i64: 1, 128>}, {transform_indices = @transform_5, window_bounds = array<i64: 8, 128>}]} {
    %c0 = arith.constant 0 : index
    %c0_0 = arith.constant 0 : index
    %0 = vector.load %arg4[%c0, %c0_0] : memref<8x128xf32, #tpu.memory_space<vmem>>, vector<8x128xf32>
    %1 = vector.extract_strided_slice %0 {offsets = [0, 0], sizes = [1, 128], strides = [1, 1]} : vector<8x128xf32> to vector<1x128xf32>
    %2 = vector.extract_strided_slice %0 {offsets = [1, 0], sizes = [1, 128], strides = [1, 1]} : vector<8x128xf32> to vector<1x128xf32>
    %3 = vector.extract_strided_slice %0 {offsets = [2, 0], sizes = [1, 128], strides = [1, 1]} : vector<8x128xf32> to vector<1x128xf32>
    %4 = vector.extract_strided_slice %0 {offsets = [3, 0], sizes = [1, 128], strides = [1, 1]} : vector<8x128xf32> to vector<1x128xf32>
    %c0_1 = arith.constant 0 : index
    %c0_2 = arith.constant 0 : index
    %5 = vector.load %arg2[%c0_1, %c0_2] : memref<8x128xbf16, #tpu.memory_space<vmem>>, vector<8x128xbf16>
    %6 = arith.extf %5 : vector<8x128xbf16> to vector<8x128xf32>
    %7 = vector.broadcast %1 : vector<1x128xf32> to vector<8x128xf32>
    %8 = arith.mulf %6, %7 : vector<8x128xf32>
    %9 = vector.broadcast %2 : vector<1x128xf32> to vector<8x128xf32>
    %10 = arith.addf %8, %9 : vector<8x128xf32>
    %cst = arith.constant 0.000000e+00 : f32
    %11 = vector.broadcast %cst : f32 to vector<8x128xf32>
    %12 = arith.maximumf %10, %11 : vector<8x128xf32>
    %c0_3 = arith.constant 0 : index
    %c0_4 = arith.constant 0 : index
    %13 = vector.load %arg3[%c0_3, %c0_4] : memref<8x128xbf16, #tpu.memory_space<vmem>>, vector<8x128xbf16>
    %14 = arith.extf %13 : vector<8x128xbf16> to vector<8x128xf32>
    %15 = vector.broadcast %3 : vector<1x128xf32> to vector<8x128xf32>
    %16 = arith.mulf %14, %15 : vector<8x128xf32>
    %17 = vector.broadcast %4 : vector<1x128xf32> to vector<8x128xf32>
    %18 = arith.addf %16, %17 : vector<8x128xf32>
    %cst_5 = arith.constant 0.000000e+00 : f32
    %19 = vector.broadcast %cst_5 : f32 to vector<8x128xf32>
    %20 = arith.maximumf %18, %19 : vector<8x128xf32>
    %21 = arith.truncf %12 : vector<8x128xf32> to vector<8x128xbf16>
    %22 = arith.truncf %20 : vector<8x128xf32> to vector<8x128xbf16>
    %23 = tpu.concatenate %21, %22 in 1 : vector<8x128xbf16>, vector<8x128xbf16> -> vector<8x256xbf16>
    %c0_6 = arith.constant 0 : index
    %c0_7 = arith.constant 0 : index
    %24 = vector.load %arg5[%c0_6, %c0_7] : memref<256x128xbf16, #tpu.memory_space<vmem>>, vector<256x128xbf16>
    %cst_8 = arith.constant dense<0.000000e+00> : vector<8x128xf32>
    %25 = tpu.matmul %23, %24, %cst_8 {dimension_numbers = #tpu.dot_dimension_numbers<[1], [0], [0], [1], [0, 0, 1, 1], [], []>} : vector<8x256xbf16>, vector<256x128xbf16>, vector<8x128xf32> -> vector<8x128xf32>
    %c0_9 = arith.constant 0 : index
    %c0_10 = arith.constant 0 : index
    %26 = vector.load %arg6[%c0_9, %c0_10] : memref<1x128xf32, #tpu.memory_space<vmem>>, vector<1x128xf32>
    %27 = vector.broadcast %26 : vector<1x128xf32> to vector<8x128xf32>
    %28 = arith.addf %25, %27 : vector<8x128xf32>
    %29 = arith.truncf %28 : vector<8x128xf32> to vector<8x128xbf16>
    %c0_11 = arith.constant 0 : index
    %c0_12 = arith.constant 0 : index
    %30 = vector.load %arg7[%c0_11, %c0_12] : memref<8x128xbf16, #tpu.memory_space<vmem>>, vector<8x128xbf16>
    tpu.vector_store %arg7[%c0_11, %c0_12], %29 {strides = array<i32>} : memref<8x128xbf16, #tpu.memory_space<vmem>>, vector<8x128xbf16>,
    return
  }
  func.func @transform_0(%arg0: i32, %arg1: i32) -> (i32, i32) {
    %c0_i32 = arith.constant 0 : i32
    %c0_i32_0 = arith.constant 0 : i32
    return %arg0, %c0_i32 : i32, i32
  }
  func.func @transform_1(%arg0: i32, %arg1: i32) -> (i32, i32) {
    %c0_i32 = arith.constant 0 : i32
    %c0_i32_0 = arith.constant 0 : i32
    return %arg0, %c0_i32 : i32, i32
  }
  func.func @transform_2(%arg0: i32, %arg1: i32) -> (i32, i32) {
    %c0_i32 = arith.constant 0 : i32
    %c0_i32_0 = arith.constant 0 : i32
    %c0_i32_1 = arith.constant 0 : i32
    return %c0_i32, %c0_i32_0 : i32, i32
  }
  func.func @transform_3(%arg0: i32, %arg1: i32) -> (i32, i32) {
    %c0_i32 = arith.constant 0 : i32
    %c0_i32_0 = arith.constant 0 : i32
    return %c0_i32, %arg1 : i32, i32
  }
  func.func @transform_4(%arg0: i32, %arg1: i32) -> (i32, i32) {
    %c0_i32 = arith.constant 0 : i32
    %c0_i32_0 = arith.constant 0 : i32
    return %c0_i32, %arg1 : i32, i32
  }
  func.func @transform_5(%arg0: i32, %arg1: i32) -> (i32, i32) {
    %c0_i32 = arith.constant 0 : i32
    return %arg0, %arg1 : i32, i32
  }
}

</mosaic_0001>

<bundles_post_ra>
// kernel: tpu_custom_call.1
= control target key start
LH: loop header
LB: loop body
LE: loop exit
PB: predicated region body
PF: predicated region fallthrough
CT: control target
= control target key end

     0   :  { %10 = vsyncpa [#allocation3], 0  ;;  %s519_s0 = inlined_call_operand.hbm [shape: bf16[8,128], index: 0, kind: input, shape index: {}]   ;;  %s520_s1 = inlined_call_operand.hbm [shape: bf16[8,128], index: 1, kind: input, shape index: {}]   ;;  %s521_s2 = inlined_call_operand.hbm [shape: f32[8,128], index: 2, kind: input, shape index: {}]   ;;  %s522_s3 = inlined_call_operand.hbm [shape: bf16[256,128], index: 3, kind: input, shape index: {}]   ;;  %s523_s4 = inlined_call_operand.vmem [shape: f32[1,128], index: 4, kind: input, shape index: {}]   ;;  %s524_s5 = inlined_call_operand.hbm [shape: bf16[8,128], index: 5, kind: output, shape index: {}]  }
   0x1   :  { %11 = vsyncpa [#allocation6], 0 }
   0x2   :  { %12 = vsyncpa [#allocation9], 0 }
   0x3   :  { %13 = vsyncpa [#allocation4], 0  ;;  %s464_s18 = smov [#allocation5]   ;;  %s465_s20 = smov [#allocation2]  }
   0x4   :  { %s30_s19 = sshll.u32 %s464_s18, 4  ;;  %s20_s21 = sshll.u32 %s465_s20, 4  ;;  %s31_s19 = int_to_ptr.vmem [resolvable:$true] %s30_s19  ;;  %s21_s21 = int_to_ptr.vmem [resolvable:$true] %s20_s21 }
   0x5   :  { %s364_s22 = scalar_lea.vmem %s31_s19, 64  ;;  %p369_p1 = scmp.lt.s32.totalorder %s31_s19, %s31_s19 }
   0x6   :  { %p365_p0 = scmp.ne.s32.totalorder %s31_s19, %s364_s22  ;;  %p370_p2 = scmp.lt.s32.totalorder %s364_s22, %s364_s22 }
   0x8   :  { %p371_p3 = por %p370_p2, %p369_p1 }
   0xa   :  { %p372_p4 = pnand %p371_p3, %p365_p0 }
   0xc   :  { %375 = shalt.err (!%p372_p4)
}
   0xd   :  { %33 = dma.hbm_to_vmem [thread:$0]  %s520_s1, 64, %s31_s19, [#allocation6]  }
   0xe   :  { %s384_s25 = scalar_lea.vmem %s21_s21, 64  ;;  %p389_p6 = scmp.lt.s32.totalorder %s21_s21, %s21_s21 }
   0xf   :  { %p385_p5 = scmp.ne.s32.totalorder %s21_s21, %s384_s25  ;;  %p390_p7 = scmp.lt.s32.totalorder %s384_s25, %s384_s25 }
  0x11   :  { %p391_p8 = por %p390_p7, %p389_p6 }
  0x13   :  { %p392_p9 = pnand %p391_p8, %p385_p5 }
  0x15   :  { %395 = shalt.err (!%p392_p9)
}
  0x16   :  { %23 = dma.hbm_to_vmem [thread:$0]  %s519_s0, 64, %s21_s21, [#allocation3]  }
  0x17   :  { %s466_s28 = smov [#allocation7]   ;;  %s467_s30 = smov [#allocation8]  }
  0x18   :  { %s40_s29 = sshll.u32 %s466_s28, 4  ;;  %s49_s6 = sshll.u32 %s467_s30, 4  ;;  %s41_s29 = int_to_ptr.vmem [resolvable:$true] %s40_s29  ;;  %s50_s6 = int_to_ptr.vmem [resolvable:$true] %s49_s6 }
  0x19   :  { %s404_s7 = scalar_lea.vmem %s41_s29, 128  ;;  %p409_p11 = scmp.lt.s32.totalorder %s41_s29, %s41_s29 }
  0x1a   :  { %p405_p10 = scmp.ne.s32.totalorder %s41_s29, %s404_s7  ;;  %p410_p12 = scmp.lt.s32.totalorder %s404_s7, %s404_s7 }
  0x1c   :  { %p411_p13 = por %p410_p12, %p409_p11 }
  0x1e   :  { %p412_p0 = pnand %p411_p13, %p405_p10 }
  0x20   :  { %415 = shalt.err (!%p412_p0)
}
  0x21   :  { %43 = dma.hbm_to_vmem [thread:$0]  %s521_s2, 128, %s41_s29, [#allocation6]  }
  0x22   :  { %s424_s9 = scalar_lea.vmem %s50_s6, 2048  ;;  %p429_p2 = scmp.lt.s32.totalorder %s50_s6, %s50_s6 }
  0x23   :  { %p425_p1 = scmp.ne.s32.totalorder %s50_s6, %s424_s9  ;;  %p430_p3 = scmp.lt.s32.totalorder %s424_s9, %s424_s9 }
  0x25   :  { %p431_p4 = por %p430_p3, %p429_p2 }
  0x27   :  { %p432_p5 = pnand %p431_p4, %p425_p1 }
  0x29   :  { %435 = shalt.err (!%p432_p5)
}
  0x2a   :  { %s468_s0 = smov 64   ;;  %s469_s10 = smov 4  }
  0x2b   :  { %55 = dma.hbm_to_vmem [thread:$0]  %s522_s3, 2048, %s50_s6, [#allocation9], %s468_s0, %s468_s0, %s469_s10  }
  0x2c   :  { %456 = dma.done.wait [#allocation3], 64  }
  0x2d   :  { %457 = vsyncadd [#allocation3], 4294967232 }
  0x2e   :  { %458 = dma.done.wait [#allocation6], 192  }
  0x2f   :  { %459 = vsyncadd [#allocation6], 4294967104 }
  0x30   :  { %460 = dma.done.wait [#allocation9], 2048  }
  0x31   :  { %461 = vsyncadd [#allocation9], 4294965248  ;;  %v340_v0 = vld [vmem:[#allocation8 + $0x78] sm:$0xff]   ;;  %v342_v2 = vld [vmem:[#allocation8 + $0x70] sm:$0xff]   ;;  %v74_v5 = vlaneseq  ;;  %s470_s13 = smov [#allocation10]  }
  0x32   :  { %v341_v1 = vld [vmem:[#allocation8 + $0x38] sm:$0xff]   ;;  %311 = vmatprep.subr.bf16.mxu0 %v340_v0  ;;  %v343_v3 = vld [vmem:[#allocation8 + $0x30] sm:$0xff]   ;;  %v344_v4 = vld [vmem:[#allocation8 + $0x68] sm:$0xff]   ;;  %s283_s14 = sshll.u32 %s470_s13, 4  ;;  %s284_s14 = int_to_ptr.vmem [resolvable:$true] %s283_s14 }
  0x33   :  { %312 = vmatpush3.bf16.msra.mxu0 %v341_v1  ;;  %v345_v6 = vld [vmem:[#allocation8 + $0x28] sm:$0xff]   ;;  %v346_v7 = vld [vmem:[#allocation8 + $0x60] sm:$0xff]   ;;  %v75_v8 = vshrl.u32 %v74_v5, 7  ;;  %v348_v10 = vld [vmem:[#allocation8 + $0x58] sm:$0xff]   ;;  %s436_s15 = scalar_lea.vmem %s284_s14, 64  ;;  %p441_p7 = scmp.lt.s32.totalorder %s284_s14, %s284_s14 }
  0x34   :  { %313 = vmatprep.subr.bf16.mxu0 %v342_v2  ;;  %v347_v9 = vld [vmem:[#allocation8 + $0x20] sm:$0xff]   ;;  %v349_v14 = vld [vmem:[#allocation8 + $0x18] sm:$0xff]   ;;  %v350_v16 = vld [vmem:[#allocation8 + $0x50] sm:$0xff]   ;;  %p437_p6 = scmp.ne.s32.totalorder %s284_s14, %s436_s15  ;;  %p442_p8 = scmp.lt.s32.totalorder %s436_s15, %s436_s15 }
  0x35   :  { %v89_v11 = vsub.s32 2, %v75_v8  ;;  %v94_v12 = vsub.s32 3, %v75_v8  ;;  %v76_v13 = vsub.s32 0, %v75_v8  ;;  %v81_v15 = vsub.s32 1, %v75_v8  ;;  %v71_v17 = vld [vmem:[#allocation7] sm:$0xff]  ;;  %v351_v26 = vld [vmem:[#allocation8 + $0x10] sm:$0xff]  }
  0x36   :  { %v85_v18 = vld [vmem:[#allocation5] sm:$0xf]  ;;  %v72_v19 = vld [vmem:[#allocation2] sm:$0xf]  ;;  %v352_v28 = vld [vmem:[#allocation8 + $0x48] sm:$0xff]   ;;  %p443_p9 = por %p442_p8, %p441_p7 }
  0x37   :  { %314 = vmatpush3.bf16.msra.mxu0 %v343_v3  ;;  %v86_v20 = vunpack.c.l.bf16 %v85_v18  ;;  %v90_v21 = vrot.slane %v71_v17, %v89_v11  ;;  %v95_v22 = vrot.slane %v71_v17, %v94_v12  ;;  %v73_v23 = vunpack.c.l.bf16 %v72_v19  ;;  %v353_v32 = vld [vmem:[#allocation8 + $0x8] sm:$0xff]   ;;  %v354_v34 = vld [vmem:[#allocation8 + $0x40] sm:$0xff]   ;;  %v294_v40 = vld [vmem:[%s523_s4] ss:$0 sm:$0xff] }
  0x38   :  { %315 = vmatprep.subr.bf16.mxu0 %v344_v4  ;;  %v77_v24 = vrot.slane %v71_v17, %v76_v13  ;;  %v82_v25 = vrot.slane %v71_v17, %v81_v15  ;;  %v355_v37 = vld [vmem:[#allocation8] sm:$0xff]   ;;  %p444_p10 = pnand %p443_p9, %p437_p6 }
  0x39   :  { %v91_v27 = vmul.f32 %v90_v21, %v86_v20 }
  0x3a   :  { %v78_v29 = vmul.f32 %v77_v24, %v73_v23 }
  0x3b   :  { %316 = vmatpush3.bf16.msra.mxu0 %v345_v6  ;;  %v96_v30 = vadd.f32 %v95_v22, %v91_v27 }
  0x3c   :  { %317 = vmatprep.subr.bf16.mxu0 %v346_v7  ;;  %v83_v31 = vadd.f32 %v82_v25, %v78_v29 }
  0x3d   :  { %v97_v33 = vmax.f32 %v96_v30, 0.0 }
  0x3e   :  { %v84_v36 = vmax.f32 %v83_v31, 0.0 }
  0x3f   :  { %318 = vmatpush3.bf16.msra.mxu0 %v347_v9  ;;  %v99_v35 = vpack.c.bf16 %v97_v33, %v97_v33 }
  0x40   :  { %319 = vmatprep.subr.bf16.mxu0 %v348_v10  ;;  %v98_v38 = vpack.c.bf16 %v84_v36, %v84_v36 }
  0x41   :  { %267 = vmatprep.mubr.bf16.mxu0 %v99_v35 }
  0x43   :  { %320 = vmatpush3.bf16.msra.mxu0 %v349_v14 }
  0x44   :  { %321 = vmatprep.subr.bf16.mxu0 %v350_v16 }
  0x47   :  { %322 = vmatpush3.bf16.msra.mxu0 %v351_v26 }
  0x48   :  { %323 = vmatprep.subr.bf16.mxu0 %v352_v28 }
  0x4b   :  { %324 = vmatpush3.bf16.msra.mxu0 %v353_v32 }
  0x4c   :  { %325 = vmatprep.subr.bf16.mxu0 %v354_v34 }
  0x4f   :  { %326 = vmatpush3.bf16.msra.mxu0 %v355_v37 }
  0x52   :  { %268 = vmatmul.mubr.bf16.vlgmr.msra.gmra.mxu0 %v98_v38 }
 0x112   :  { %v327_v39 = vpop.f32.mrf.mxu0 }
 0x114   :  { %v328_v41 = vpop.f32.mrf.mxu0 }
 0x115   :  { %v329_v42 = vadd.f32 %v328_v41, %v327_v39 }
 0x116   :  { %v330_v43 = vpop.f32.mrf.mxu0 }
 0x117   :  { %v270_v44 = vadd.f32 %v329_v42, %v294_v40 }
 0x118   :  { %v331_v45 = vpop.f32.mrf.mxu0 }
 0x119   :  { %v275_v46 = vpack.c.bf16 %v270_v44, %v270_v44 }
 0x11b   :  { %276 = vst [vmem:[#allocation10] sm:$0xf] %v275_v46 }
 0x11c   :  { %447 = shalt.err (!%p444_p10)
}
 0x11d   :  { %286 = dma.vmem_to_hbm [thread:$0]  %s284_s14, 64, %s524_s5, [#allocation4]  }
 0x11e   :  { %462 = dma.done.wait [#allocation4], 64  }
 0x11f   :  { %463 = vsyncadd [#allocation4], 4294967232 }
 0x120   :  { %290 = vsyncpa [#allocation3], 1 }
 0x121   :  { %291 = vsyncpa [#allocation6], 1 }
 0x122   :  { %292 = vsyncpa [#allocation9], 1 }
 0x123   :  { %293 = vsyncpa [#allocation4], 1 }

</bundles_post_ra>
